<compile_context>
chip_gen: v7x
topology: tpu7x:2x2x1
jax: 0.10.0
libtpu: 0.0.40
codegen_flags: <defaults>
</compile_context>

<pallas_src>
import jax
import jax.numpy as jnp
from jax.experimental import pallas as pl
from jax.experimental.pallas import tpu as pltpu

BN_EPS = 1e-5


def _round_up(n, m):
    return ((n + m - 1) // m) * m


def _pad2(a, shape):
    pads = [(0, s - d) for s, d in zip(shape, a.shape)]
    if any(p[1] for p in pads):
        a = jnp.pad(a, pads)
    return a


def _pick_hidden_tile(hid_p):
    for t in (512, 256, 128):
        if hid_p % t == 0:
            return t
    return hid_p  # unreachable: hid_p is a multiple of 128


def _prediction_mlp_kernel(x_ref, w1_ref, gamma_ref, beta_ref, w2_ref, b2_ref,
                           o_ref, acc_ref):
    k = pl.program_id(0)

    @pl.when(k == 0)
    def _init():
        acc_ref[...] = jnp.zeros_like(acc_ref)

    # ---- layer1 Linear (bf16 MXU, f32 accumulate). Bias omitted: a pre-BN
    # bias is cancelled exactly by the BatchNorm mean subtraction. ----
    h = jnp.dot(x_ref[...], w1_ref[...],
                preferred_element_type=jnp.float32)          # [B, TH] f32

    # ---- BatchNorm1d (training mode: batch stats, biased variance) ----
    mean = jnp.mean(h, axis=0, keepdims=True)                # [1, TH]
    centered = h - mean
    var = jnp.mean(centered * centered, axis=0, keepdims=True)
    scale = jax.lax.rsqrt(var + BN_EPS) * gamma_ref[...]     # fold inv_std*gamma
    h = centered * scale + beta_ref[...]

    # ---- ReLU, back to bf16 for the second MXU pass ----
    h = jnp.maximum(h, 0.0).astype(jnp.bfloat16)

    # ---- layer2 partial product, accumulated in f32 scratch ----
    acc_ref[...] += jnp.dot(h, w2_ref[...],
                            preferred_element_type=jnp.float32)

    @pl.when(k == pl.num_programs(0) - 1)
    def _finalize():
        o_ref[...] = (acc_ref[...] + b2_ref[...]).astype(o_ref.dtype)


def prediction_mlp(x, w1, b1, gamma, beta, w2, b2):
    """x: [B, in_dim] f32. Weights stored [in, out]; bias/BN params [1, feat]."""
    B, in_dim = x.shape
    hidden_dim = w1.shape[1]
    out_dim = w2.shape[1]

    # Pad feature dims up to lane multiples (128); keep B unpadded so BN
    # batch statistics stay exact.
    in_p = _round_up(in_dim, 128)
    hid_p = _round_up(hidden_dim, 128)
    out_p = _round_up(out_dim, 128)

    x_p = _pad2(x, (B, in_p)).astype(jnp.bfloat16)
    w1_p = _pad2(w1, (in_p, hid_p)).astype(jnp.bfloat16)
    w2_p = _pad2(w2, (hid_p, out_p)).astype(jnp.bfloat16)
    gamma_p = _pad2(gamma, (1, hid_p)).astype(jnp.float32)
    beta_p = _pad2(beta, (1, hid_p)).astype(jnp.float32)
    b2_p = _pad2(b2, (1, out_p)).astype(jnp.float32)
    del b1  # cancelled by training-mode BatchNorm mean subtraction

    TH = _pick_hidden_tile(hid_p)
    grid = (hid_p // TH,)

    # VMEM budget: resident x + double-buffered weight tiles + accumulator +
    # resident output block, with headroom.
    est = (B * in_p * 2                 # resident bf16 x
           + 2 * in_p * TH * 2          # double-buffered w1 tiles
           + 2 * TH * out_p * 2         # double-buffered w2 tiles
           + 4 * TH * 4                 # gamma/beta tile buffers
           + out_p * 4                  # b2 row
           + B * out_p * 4              # f32 accumulator scratch
           + B * out_p * 4)             # resident output block
    vmem_limit = int(min(max(2 * est, 32 * 1024 * 1024), 100 * 1024 * 1024))

    grid_spec = pltpu.PrefetchScalarGridSpec(
        num_scalar_prefetch=0,
        grid=grid,
        in_specs=[
            pl.BlockSpec((B, in_p), lambda k: (0, 0)),      # x (resident)
            pl.BlockSpec((in_p, TH), lambda k: (0, k)),     # w1 tile
            pl.BlockSpec((1, TH), lambda k: (0, k)),        # gamma tile
            pl.BlockSpec((1, TH), lambda k: (0, k)),        # beta tile
            pl.BlockSpec((TH, out_p), lambda k: (k, 0)),    # w2 tile
            pl.BlockSpec((1, out_p), lambda k: (0, 0)),     # b2 (resident)
        ],
        out_specs=pl.BlockSpec((B, out_p), lambda k: (0, 0)),
        scratch_shapes=[pltpu.VMEM((B, out_p), jnp.float32)],
    )

    out = pl.pallas_call(
        _prediction_mlp_kernel,
        out_shape=jax.ShapeDtypeStruct((B, out_p), jnp.float32),
        grid_spec=grid_spec,
        compiler_params=pltpu.CompilerParams(
            dimension_semantics=("arbitrary",),   # hidden-dim reduction
            vmem_limit_bytes=vmem_limit),
    )(x_p, w1_p, gamma_p, beta_p, w2_p, b2_p)

    return out[:, :out_dim]


def _reference(x, w1, b1, gamma, beta, w2, b2):
    """Full-precision reference with the original (pre-BN biased) semantics."""
    h = x @ w1 + b1
    mean = h.mean(axis=0, keepdims=True)
    var = ((h - mean) ** 2).mean(axis=0, keepdims=True)
    h = (h - mean) / jnp.sqrt(var + BN_EPS) * gamma + beta
    h = jnp.maximum(h, 0.0)
    return h @ w2 + b2


if __name__ == "__main__":
    # Small shapes consistent with the module's Linear/BN structure.
    B, in_dim, hidden_dim, out_dim = 8, 32, 16, 32

    key = jax.random.PRNGKey(0)
    ks = jax.random.split(key, 8)

    x = jax.random.normal(ks[0], (B, in_dim), jnp.float32)
    w1 = jax.random.normal(ks[1], (in_dim, hidden_dim), jnp.float32) * 0.05
    b1 = jax.random.normal(ks[2], (1, hidden_dim), jnp.float32) * 0.01
    gamma = 1.0 + 0.1 * jax.random.normal(ks[3], (1, hidden_dim), jnp.float32)
    beta = 0.1 * jax.random.normal(ks[4], (1, hidden_dim), jnp.float32)
    w2 = jax.random.normal(ks[5], (hidden_dim, out_dim), jnp.float32) * 0.05
    b2 = jax.random.normal(ks[6], (1, out_dim), jnp.float32) * 0.01

    out = prediction_mlp(x, w1, b1, gamma, beta, w2, b2)
    out = jax.block_until_ready(out)

    ref = _reference(x, w1, b1, gamma, beta, w2, b2)
    assert out.shape == (B, out_dim)
    # bf16 MXU operands -> relaxed tolerance vs the pure-f32 reference.
    assert jnp.allclose(out, ref, atol=3e-2, rtol=3e-2), "mismatch vs reference"

    print("KERNEL_OK")
</pallas_src>

<mosaic_0001>
module attributes {stable_mosaic.version = 11 : i64} {
  func.func @_prediction_mlp_kernel(%arg0: i32, %arg1: memref<8x128xbf16, #tpu.memory_space<vmem>>, %arg2: memref<128x128xbf16, #tpu.memory_space<vmem>>, %arg3: memref<1x128xf32, #tpu.memory_space<vmem>>, %arg4: memref<1x128xf32, #tpu.memory_space<vmem>>, %arg5: memref<128x128xbf16, #tpu.memory_space<vmem>>, %arg6: memref<1x128xf32, #tpu.memory_space<vmem>>, %arg7: memref<8x128xf32, #tpu.memory_space<vmem>>, %arg8: memref<8x128xf32, #tpu.memory_space<vmem>>) attributes {dimension_semantics = [#tpu.dimension_semantics<arbitrary>], iteration_bounds = array<i64: 1>, scalar_prefetch = 0 : i64, scratch_operands = 1 : i64, tpu.core_type = #tpu.core_type<tc>, window_params = [{pipeline_mode = #tpu.pipeline_mode<synchronous>, transform_indices = @transform_0, window_bounds = array<i64: 8, 128>}, {transform_indices = @transform_1, window_bounds = array<i64: 128, 128>}, {transform_indices = @transform_2, window_bounds = array<i64: 1, 128>}, {transform_indices = @transform_3, window_bounds = array<i64: 1, 128>}, {transform_indices = @transform_4, window_bounds = array<i64: 128, 128>}, {pipeline_mode = #tpu.pipeline_mode<synchronous>, transform_indices = @transform_5, window_bounds = array<i64: 1, 128>}, {pipeline_mode = #tpu.pipeline_mode<synchronous>, transform_indices = @transform_6, window_bounds = array<i64: 8, 128>}]} {
    %c0_i32 = arith.constant 0 : i32
    %0 = arith.cmpi eq, %arg0, %c0_i32 : i32
    %1 = arith.extui %0 : i1 to i32
    %c0_i32_0 = arith.constant 0 : i32
    %2 = arith.cmpi ne, %1, %c0_i32_0 : i32
    scf.if %2 {
      %cst_23 = arith.constant 0.000000e+00 : f32
      %38 = vector.broadcast %cst_23 : f32 to vector<8x128xf32>
      %c0_24 = arith.constant 0 : index
      %c0_25 = arith.constant 0 : index
      %39 = vector.load %arg8[%c0_24, %c0_25] : memref<8x128xf32, #tpu.memory_space<vmem>>, vector<8x128xf32>
      tpu.vector_store %arg8[%c0_24, %c0_25], %38 {strides = array<i32>} : memref<8x128xf32, #tpu.memory_space<vmem>>, vector<8x128xf32>,
    } else {
    }
    %c0 = arith.constant 0 : index
    %c0_1 = arith.constant 0 : index
    %3 = vector.load %arg1[%c0, %c0_1] : memref<8x128xbf16, #tpu.memory_space<vmem>>, vector<8x128xbf16>
    %c0_2 = arith.constant 0 : index
    %c0_3 = arith.constant 0 : index
    %4 = vector.load %arg2[%c0_2, %c0_3] : memref<128x128xbf16, #tpu.memory_space<vmem>>, vector<128x128xbf16>
    %cst = arith.constant dense<0.000000e+00> : vector<8x128xf32>
    %5 = tpu.matmul %3, %4, %cst {dimension_numbers = #tpu.dot_dimension_numbers<[1], [0], [0], [1], [0, 0, 1, 1], [], []>} : vector<8x128xbf16>, vector<128x128xbf16>, vector<8x128xf32> -> vector<8x128xf32>
    %cst_4 = arith.constant dense<0.000000e+00> : vector<128xf32>
    %6 = vector.multi_reduction <add>, %5, %cst_4 [0] : vector<8x128xf32> to vector<128xf32>
    %7 = vector.shape_cast %6 : vector<128xf32> to vector<1x128xf32>
    %cst_5 = arith.constant 8.000000e+00 : f32
    %8 = vector.broadcast %cst_5 : f32 to vector<1x128xf32>
    %9 = arith.divf %7, %8 : vector<1x128xf32>
    %10 = vector.broadcast %9 : vector<1x128xf32> to vector<8x128xf32>
    %11 = arith.subf %5, %10 : vector<8x128xf32>
    %12 = arith.mulf %11, %11 : vector<8x128xf32>
    %cst_6 = arith.constant dense<0.000000e+00> : vector<128xf32>
    %13 = vector.multi_reduction <add>, %12, %cst_6 [0] : vector<8x128xf32> to vector<128xf32>
    %14 = vector.shape_cast %13 : vector<128xf32> to vector<1x128xf32>
    %cst_7 = arith.constant 8.000000e+00 : f32
    %15 = vector.broadcast %cst_7 : f32 to vector<1x128xf32>
    %16 = arith.divf %14, %15 : vector<1x128xf32>
    %cst_8 = arith.constant 9.99999974E-6 : f32
    %17 = vector.broadcast %cst_8 : f32 to vector<1x128xf32>
    %18 = arith.addf %16, %17 : vector<1x128xf32>
    %19 = math.rsqrt %18 : vector<1x128xf32>
    %c0_9 = arith.constant 0 : index
    %c0_10 = arith.constant 0 : index
    %20 = vector.load %arg3[%c0_9, %c0_10] : memref<1x128xf32, #tpu.memory_space<vmem>>, vector<1x128xf32>
    %21 = arith.mulf %19, %20 : vector<1x128xf32>
    %22 = vector.broadcast %21 : vector<1x128xf32> to vector<8x128xf32>
    %23 = arith.mulf %11, %22 : vector<8x128xf32>
    %c0_11 = arith.constant 0 : index
    %c0_12 = arith.constant 0 : index
    %24 = vector.load %arg4[%c0_11, %c0_12] : memref<1x128xf32, #tpu.memory_space<vmem>>, vector<1x128xf32>
    %25 = vector.broadcast %24 : vector<1x128xf32> to vector<8x128xf32>
    %26 = arith.addf %23, %25 : vector<8x128xf32>
    %cst_13 = arith.constant 0.000000e+00 : f32
    %27 = vector.broadcast %cst_13 : f32 to vector<8x128xf32>
    %28 = arith.maximumf %26, %27 : vector<8x128xf32>
    %29 = arith.truncf %28 : vector<8x128xf32> to vector<8x128xbf16>
    %c0_14 = arith.constant 0 : index
    %c0_15 = arith.constant 0 : index
    %30 = vector.load %arg8[%c0_14, %c0_15] : memref<8x128xf32, #tpu.memory_space<vmem>>, vector<8x128xf32>
    %c0_16 = arith.constant 0 : index
    %c0_17 = arith.constant 0 : index
    %31 = vector.load %arg5[%c0_16, %c0_17] : memref<128x128xbf16, #tpu.memory_space<vmem>>, vector<128x128xbf16>
    %cst_18 = arith.constant dense<0.000000e+00> : vector<8x128xf32>
    %32 = tpu.matmul %29, %31, %cst_18 {dimension_numbers = #tpu.dot_dimension_numbers<[1], [0], [0], [1], [0, 0, 1, 1], [], []>} : vector<8x128xbf16>, vector<128x128xbf16>, vector<8x128xf32> -> vector<8x128xf32>
    %33 = arith.addf %30, %32 : vector<8x128xf32>
    %c0_19 = arith.constant 0 : index
    %c0_20 = arith.constant 0 : index
    %34 = vector.load %arg8[%c0_19, %c0_20] : memref<8x128xf32, #tpu.memory_space<vmem>>, vector<8x128xf32>
    tpu.vector_store %arg8[%c0_19, %c0_20], %33 {strides = array<i32>} : memref<8x128xf32, #tpu.memory_space<vmem>>, vector<8x128xf32>,
    %c0_i32_21 = arith.constant 0 : i32
    %35 = arith.cmpi eq, %arg0, %c0_i32_21 : i32
    %36 = arith.extui %35 : i1 to i32
    %c0_i32_22 = arith.constant 0 : i32
    %37 = arith.cmpi ne, %36, %c0_i32_22 : i32
    scf.if %37 {
      %c0_23 = arith.constant 0 : index
      %c0_24 = arith.constant 0 : index
      %38 = vector.load %arg8[%c0_23, %c0_24] : memref<8x128xf32, #tpu.memory_space<vmem>>, vector<8x128xf32>
      %c0_25 = arith.constant 0 : index
      %c0_26 = arith.constant 0 : index
      %39 = vector.load %arg6[%c0_25, %c0_26] : memref<1x128xf32, #tpu.memory_space<vmem>>, vector<1x128xf32>
      %40 = vector.broadcast %39 : vector<1x128xf32> to vector<8x128xf32>
      %41 = arith.addf %38, %40 : vector<8x128xf32>
      %c0_27 = arith.constant 0 : index
      %c0_28 = arith.constant 0 : index
      %42 = vector.load %arg7[%c0_27, %c0_28] : memref<8x128xf32, #tpu.memory_space<vmem>>, vector<8x128xf32>
      tpu.vector_store %arg7[%c0_27, %c0_28], %41 {strides = array<i32>} : memref<8x128xf32, #tpu.memory_space<vmem>>, vector<8x128xf32>,
    } else {
    }
    return
  }
  func.func @transform_0(%arg0: i32) -> (i32, i32) {
    %c0_i32 = arith.constant 0 : i32
    %c0_i32_0 = arith.constant 0 : i32
    %c0_i32_1 = arith.constant 0 : i32
    return %c0_i32, %c0_i32_0 : i32, i32
  }
  func.func @transform_1(%arg0: i32) -> (i32, i32) {
    %c0_i32 = arith.constant 0 : i32
    %c0_i32_0 = arith.constant 0 : i32
    return %c0_i32, %arg0 : i32, i32
  }
  func.func @transform_2(%arg0: i32) -> (i32, i32) {
    %c0_i32 = arith.constant 0 : i32
    %c0_i32_0 = arith.constant 0 : i32
    return %c0_i32, %arg0 : i32, i32
  }
  func.func @transform_3(%arg0: i32) -> (i32, i32) {
    %c0_i32 = arith.constant 0 : i32
    %c0_i32_0 = arith.constant 0 : i32
    return %c0_i32, %arg0 : i32, i32
  }
  func.func @transform_4(%arg0: i32) -> (i32, i32) {
    %c0_i32 = arith.constant 0 : i32
    %c0_i32_0 = arith.constant 0 : i32
    return %arg0, %c0_i32 : i32, i32
  }
  func.func @transform_5(%arg0: i32) -> (i32, i32) {
    %c0_i32 = arith.constant 0 : i32
    %c0_i32_0 = arith.constant 0 : i32
    %c0_i32_1 = arith.constant 0 : i32
    return %c0_i32, %c0_i32_0 : i32, i32
  }
  func.func @transform_6(%arg0: i32) -> (i32, i32) {
    %c0_i32 = arith.constant 0 : i32
    %c0_i32_0 = arith.constant 0 : i32
    %c0_i32_1 = arith.constant 0 : i32
    return %c0_i32, %c0_i32_0 : i32, i32
  }
}

</mosaic_0001>

<bundles_post_ra>
// kernel: tpu_custom_call.1
= control target key start
LH: loop header
LB: loop body
LE: loop exit
PB: predicated region body
PF: predicated region fallthrough
CT: control target
= control target key end

     0   :  { %11 = vsyncpa [#allocation4], 0  ;;  %s648_s0 = inlined_call_operand.hbm [shape: bf16[8,128], index: 0, kind: input, shape index: {}]   ;;  %s649_s1 = inlined_call_operand.hbm [shape: bf16[128,128], index: 1, kind: input, shape index: {}]   ;;  %s650_s2 = inlined_call_operand.vmem [shape: f32[1,128], index: 2, kind: input, shape index: {}]   ;;  %s651_s3 = inlined_call_operand.vmem [shape: f32[1,128], index: 3, kind: input, shape index: {}]   ;;  %s652_s4 = inlined_call_operand.hbm [shape: bf16[128,128], index: 4, kind: input, shape index: {}]   ;;  %s653_s5 = inlined_call_operand.vmem [shape: f32[1,128], index: 5, kind: input, shape index: {}]   ;;  %s654_s6 = inlined_call_operand.hbm [shape: f32[8,128], index: 6, kind: output, shape index: {}]  }
   0x1   :  { %12 = vsyncpa [#allocation7], 0 }
   0x2   :  { %13 = vsyncpa [#allocation5], 0  ;;  %s542_s21 = smov [#allocation6]   ;;  %s448_s25 = scalar_lea.hbm %s649_s1, 1024 }
   0x3   :  { %s29_s22 = sshll.u32 %s542_s21, 4  ;;  %p449_p0 = scmp.ne.s32.totalorder %s649_s1, %s448_s25  ;;  %s30_s22 = int_to_ptr.vmem [resolvable:$true] %s29_s22 }
   0x4   :  { %p452_p1 = scmp.lt.u32.totalorder %s448_s25, %s649_s1 }
   0x6   :  { %p454_p2 = pnand %p452_p1, %p449_p0 }
   0x8   :  { %457 = shalt.err (!%p454_p2)
}
   0x9   :  { %s458_s30 = scalar_lea.vmem %s30_s22, 1024  ;;  %p463_p4 = scmp.lt.s32.totalorder %s30_s22, %s30_s22 }
   0xa   :  { %p459_p3 = scmp.ne.s32.totalorder %s30_s22, %s458_s30  ;;  %p464_p5 = scmp.lt.s32.totalorder %s458_s30, %s458_s30 }
   0xc   :  { %p465_p6 = por %p464_p5, %p463_p4 }
   0xe   :  { %p466_p7 = pnand %p465_p6, %p459_p3 }
  0x10   :  { %469 = shalt.err (!%p466_p7)
}
  0x11   :  { %s543_s7 = smov 64   ;;  %s544_s8 = smov 4  }
  0x12   :  { %35 = dma.hbm_to_vmem [thread:$0]  %s649_s1, 1024, %s30_s22, [#allocation7], %s543_s7, %s543_s7, %s544_s8  }
  0x13   :  { %s545_s11 = smov [#allocation3]   ;;  %s546_s13 = smov [#allocation8]  }
  0x14   :  { %s20_s12 = sshll.u32 %s545_s11, 4  ;;  %s45_s14 = sshll.u32 %s546_s13, 4  ;;  %s21_s12 = int_to_ptr.vmem [resolvable:$true] %s20_s12  ;;  %s46_s14 = int_to_ptr.vmem [resolvable:$true] %s45_s14 }
  0x15   :  { %s470_s17 = scalar_lea.hbm %s648_s0, 64 }
  0x16   :  { %p471_p8 = scmp.ne.s32.totalorder %s648_s0, %s470_s17  ;;  %p474_p9 = scmp.lt.u32.totalorder %s470_s17, %s648_s0 }
  0x18   :  { %p476_p10 = pnand %p474_p9, %p471_p8 }
  0x1a   :  { %479 = shalt.err (!%p476_p10)
}
  0x1b   :  { %s480_s1 = scalar_lea.vmem %s21_s12, 64  ;;  %p485_p12 = scmp.lt.s32.totalorder %s21_s12, %s21_s12 }
  0x1c   :  { %p481_p11 = scmp.ne.s32.totalorder %s21_s12, %s480_s1  ;;  %p486_p13 = scmp.lt.s32.totalorder %s480_s1, %s480_s1 }
  0x1e   :  { %p487_p0 = por %p486_p13, %p485_p12 }
  0x20   :  { %p488_p1 = pnand %p487_p0, %p481_p11 }
  0x22   :  { %491 = shalt.err (!%p488_p1)
}
  0x23   :  { %23 = dma.hbm_to_vmem [thread:$0]  %s648_s0, 64, %s21_s12, [#allocation4]  }
  0x24   :  { %s492_s26 = scalar_lea.hbm %s652_s4, 1024 }
  0x25   :  { %p493_p2 = scmp.ne.s32.totalorder %s652_s4, %s492_s26  ;;  %p496_p3 = scmp.lt.u32.totalorder %s492_s26, %s652_s4 }
  0x27   :  { %p498_p4 = pnand %p496_p3, %p493_p2 }
  0x29   :  { %501 = shalt.err (!%p498_p4)
}
  0x2a   :  { %s502_s9 = scalar_lea.vmem %s46_s14, 1024  ;;  %p507_p6 = scmp.lt.s32.totalorder %s46_s14, %s46_s14 }
  0x2b   :  { %p503_p5 = scmp.ne.s32.totalorder %s46_s14, %s502_s9  ;;  %p508_p7 = scmp.lt.s32.totalorder %s502_s9, %s502_s9 }
  0x2d   :  { %p509_p8 = por %p508_p7, %p507_p6 }
  0x2f   :  { %p510_p9 = pnand %p509_p8, %p503_p5 }
  0x31   :  { %513 = shalt.err (!%p510_p9)
}
  0x32   :  { %51 = dma.hbm_to_vmem [thread:$0]  %s652_s4, 1024, %s46_s14, [#allocation7], %s543_s7, %s543_s7, %s544_s8  }
  0x33   :  { %536 = dma.done.wait [#allocation4], 64  }
  0x34   :  { %537 = vsyncadd [#allocation4], 4294967232 }
  0x35   :  { %538 = dma.done.wait [#allocation7], 2048  }
  0x36   :  { %539 = vsyncadd [#allocation7], 4294965248  ;;  %v547_v0 = vmov 0.0   ;;  %vm548_vm0 = vmmov 0   ;;  %v430_v1 = vld [vmem:[#allocation6] sm:$0xff]   ;;  %v431_v2 = vld [vmem:[#allocation6 + $0x8] sm:$0xff]   ;;  %v195_v39 = vlaneseq }
  0x37   :  { %382 = vmatprep.subr.bf16.mxu0 %v547_v0  ;;  %398 = vmatprep.mubr.msk.bf16.mxu0 %vm548_vm0, %v547_v0  ;;  %v432_v3 = vld [vmem:[#allocation6 + $0x10] sm:$0xff]   ;;  %v433_v4 = vld [vmem:[#allocation6 + $0x18] sm:$0xff]   ;;  %v434_v5 = vld [vmem:[#allocation6 + $0x20] sm:$0xff]   ;;  %s549_s14 = smov [#allocation9]  }
  0x38   :  { %402 = vmatprep.subr.bf16.mxu1 %v547_v0  ;;  %418 = vmatprep.mubr.msk.bf16.mxu1 %vm548_vm0, %v547_v0  ;;  %v435_v6 = vld [vmem:[#allocation6 + $0x28] sm:$0xff]   ;;  %v436_v7 = vld [vmem:[#allocation6 + $0x30] sm:$0xff]   ;;  %v437_v8 = vld [vmem:[#allocation6 + $0x38] sm:$0xff]   ;;  %v196_v40 = vshrl.u32 %v195_v39, 7  ;;  %s336_s15 = sshll.u32 %s549_s14, 4  ;;  %s337_s15 = int_to_ptr.vmem [resolvable:$true] %s336_s15 }
  0x39   :  { %383 = vmatpush3.bf16.msra.mxu0 %v430_v1  ;;  %v69_v9 = vld [vmem:[#allocation3] sm:$0xf]  ;;  %v438_v10 = vld [vmem:[#allocation8] sm:$0xff]   ;;  %v439_v11 = vld [vmem:[#allocation8 + $0x8] sm:$0xff]   ;;  %p519_p11 = scmp.lt.s32.totalorder %s337_s15, %s337_s15 }
  0x3a   :  { %384 = vmatprep.subr.bf16.mxu0 %v547_v0  ;;  %403 = vmatpush3.bf16.msra.mxu1 %v438_v10  ;;  %v440_v12 = vld [vmem:[#allocation8 + $0x10] sm:$0xff]   ;;  %v441_v13 = vld [vmem:[#allocation8 + $0x18] sm:$0xff]   ;;  %v442_v14 = vld [vmem:[#allocation8 + $0x20] sm:$0xff]   ;;  %v197_v42 = vsub.s32 0, %v196_v40 }
  0x3b   :  { %404 = vmatprep.subr.bf16.mxu1 %v547_v0  ;;  %v443_v15 = vld [vmem:[#allocation8 + $0x28] sm:$0xff]   ;;  %v444_v16 = vld [vmem:[#allocation8 + $0x30] sm:$0xff]   ;;  %v445_v17 = vld [vmem:[#allocation8 + $0x38] sm:$0xff]  }
  0x3c   :  { %v193_v41 = vld [vmem:[%s650_s2] sm:$0x1]  ;;  %s514_s2 = scalar_lea.vmem %s337_s15, 128 }
  0x3d   :  { %385 = vmatpush3.bf16.msra.mxu0 %v431_v2  ;;  %v354_v46 = vld [vmem:[%s651_s3] ss:$0 sm:$0xff]  ;;  %p515_p10 = scmp.ne.s32.totalorder %s337_s15, %s514_s2  ;;  %p520_p12 = scmp.lt.s32.totalorder %s514_s2, %s514_s2 }
  0x3e   :  { %386 = vmatprep.subr.bf16.mxu0 %v547_v0  ;;  %405 = vmatpush3.bf16.msra.mxu1 %v439_v11  ;;  %v363_v51 = vld [vmem:[%s653_s5] ss:$0 sm:$0xff] }
  0x3f   :  { %406 = vmatprep.subr.bf16.mxu1 %v547_v0  ;;  %p521_p13 = por %p520_p12, %p519_p11 }
  0x41   :  { %387 = vmatpush3.bf16.msra.mxu0 %v432_v3  ;;  %p522_p0 = pnand %p521_p13, %p515_p10 }
  0x42   :  { %388 = vmatprep.subr.bf16.mxu0 %v547_v0  ;;  %407 = vmatpush3.bf16.msra.mxu1 %v440_v12 }
  0x43   :  { %408 = vmatprep.subr.bf16.mxu1 %v547_v0 }
  0x45   :  { %389 = vmatpush3.bf16.msra.mxu0 %v433_v4 }
  0x46   :  { %390 = vmatprep.subr.bf16.mxu0 %v547_v0  ;;  %409 = vmatpush3.bf16.msra.mxu1 %v441_v13 }
  0x47   :  { %410 = vmatprep.subr.bf16.mxu1 %v547_v0 }
  0x49   :  { %391 = vmatpush3.bf16.msra.mxu0 %v434_v5 }
  0x4a   :  { %392 = vmatprep.subr.bf16.mxu0 %v547_v0  ;;  %411 = vmatpush3.bf16.msra.mxu1 %v442_v14 }
  0x4b   :  { %412 = vmatprep.subr.bf16.mxu1 %v547_v0 }
  0x4d   :  { %393 = vmatpush3.bf16.msra.mxu0 %v435_v6 }
  0x4e   :  { %394 = vmatprep.subr.bf16.mxu0 %v547_v0  ;;  %413 = vmatpush3.bf16.msra.mxu1 %v443_v15 }
  0x4f   :  { %414 = vmatprep.subr.bf16.mxu1 %v547_v0 }
  0x51   :  { %395 = vmatpush3.bf16.msra.mxu0 %v436_v7 }
  0x52   :  { %396 = vmatprep.subr.bf16.mxu0 %v547_v0  ;;  %415 = vmatpush3.bf16.msra.mxu1 %v444_v16 }
  0x53   :  { %416 = vmatprep.subr.bf16.mxu1 %v547_v0 }
  0x55   :  { %397 = vmatpush3.bf16.msra.mxu0 %v437_v8 }
  0x56   :  { %417 = vmatpush3.bf16.msra.mxu1 %v445_v17 }
  0x58   :  { %399 = vmatmul.mubr.bf16.vlgmr.msra.gmra.mrb[0].mxu0 %v69_v9 }
 0x12b   :  { %v168_v18 = vpop.f32.mrb[0].mxu0 }
 0x12c   :  { %v174_v19 = vrot.slane %v168_v18, 4  ;;  %v400_v20 = vpop.f32.mrb[1].mxu0 }
 0x12d   :  { %v171_v21 = vpop.f32.mrb[2].mxu0 }
 0x12e   :  { %v175_v22 = vadd.f32 %v174_v19, %v168_v18  ;;  %v401_v23 = vpop.f32.mrb[3].mxu0 }
 0x130   :  { %v176_v24 = vrot.slane %v175_v22, 2 }
 0x132   :  { %v177_v25 = vadd.f32 %v176_v24, %v175_v22 }
 0x134   :  { %v178_v26 = vrot.slane %v177_v25, 1 }
 0x136   :  { %v179_v27 = vadd.f32 %v178_v26, %v177_v25 }
 0x138   :  { %v181_v28 = vmul.f32 0.125, %v179_v27 }
 0x13a   :  { %v182_v29 = vsub.f32 %v168_v18, %v181_v28 }
 0x13c   :  { %v183_v30 = vmul.f32 %v182_v29, %v182_v29 }
 0x13e   :  { %v184_v31 = vrot.slane %v183_v30, 4 }
 0x140   :  { %v185_v32 = vadd.f32 %v184_v31, %v183_v30 }
 0x142   :  { %v186_v33 = vrot.slane %v185_v32, 2 }
 0x144   :  { %v187_v34 = vadd.f32 %v186_v33, %v185_v32 }
 0x146   :  { %v188_v35 = vrot.slane %v187_v34, 1 }
 0x148   :  { %v189_v36 = vadd.f32 %v188_v35, %v187_v34 }
 0x14a   :  { %v190_v37 = vmul.f32 0.125, %v189_v36 }
 0x14c   :  { %v191_v38 = vadd.f32 1e-05, %v190_v37 }
 0x14e   :  { %446 = vrsqrt.f32 %v191_v38 }
 0x158   :  { %v447_v43 = vpop.eup %446 }
 0x159   :  { %v194_v44 = vmul.f32 %v447_v43, %v193_v41 }
 0x15b   :  { %v198_v45 = vrot.slane %v194_v44, %v197_v42 }
 0x15d   :  { %v199_v47 = vmul.f32 %v198_v45, %v182_v29 }
 0x15f   :  { %v207_v48 = vadd.f32 %v354_v46, %v199_v47 }
 0x161   :  { %v208_v49 = vmax.f32 %v207_v48, 0.0 }
 0x163   :  { %v209_v50 = vpack.c.bf16 %v208_v49, %v208_v49 }
 0x165   :  { %419 = vmatmul.mubr.bf16.vlgmr.msra.gmra.mrb[0].mxu1 %v209_v50 }
 0x238   :  { %v309_v52 = vpop.f32.mrb[0].mxu1 }
 0x239   :  { %v328_v53 = vadd.f32 %v363_v51, %v309_v52  ;;  %v420_v54 = vpop.f32.mrb[1].mxu1 }
 0x23a   :  { %v312_v55 = vpop.f32.mrb[2].mxu1 }
 0x23b   :  { %329 = vst [vmem:[#allocation9] sm:$0xff] %v328_v53  ;;  %v421_v56 = vpop.f32.mrb[3].mxu1 }
 0x23c   :  { %525 = shalt.err (!%p522_p0)
}
 0x23d   :  { %s526_s5 = scalar_lea.hbm %s654_s6, 128 }
 0x23e   :  { %p527_p1 = scmp.ne.s32.totalorder %s654_s6, %s526_s5  ;;  %p530_p2 = scmp.lt.u32.totalorder %s526_s5, %s654_s6 }
 0x240   :  { %p532_p3 = pnand %p530_p2, %p527_p1 }
 0x242   :  { %535 = shalt.err (!%p532_p3)
}
 0x243   :  { %339 = dma.vmem_to_hbm [thread:$0]  %s337_s15, 128, %s654_s6, [#allocation5]  }
 0x244   :  { %540 = dma.done.wait [#allocation5], 128  }
 0x245   :  { %541 = vsyncadd [#allocation5], 4294967168 }
 0x246   :  { %343 = vsyncpa [#allocation4], 1 }
 0x247   :  { %344 = vsyncpa [#allocation7], 1 }
 0x248   :  { %345 = vsyncpa [#allocation5], 1 }

</bundles_post_ra>
